<compile_context>
chip_gen: v6e
topology: v6e:2x2x1
jax: 0.10.0
libtpu: 0.0.40
codegen_flags: <defaults>
</compile_context>

<pallas_src>
import jax
import jax.numpy as jnp
from jax.experimental import pallas as pl
from jax.experimental.pallas import tpu as pltpu

_SLOPE = 0.2          # matches nn.LeakyReLU(0.2)
_LANE_TILE = 256      # lane-granularity for batch tiles


def _leaky(x):
    # slope < 1  =>  LeakyReLU(x) == max(x, slope*x): 2 VPU ops instead of 3.
    return jnp.maximum(x, _SLOPE * x)


def _round_up(n, m):
    return ((n + m - 1) // m) * m


def _mxu_is_256_deep():
    """True on 256-deep-MXU generations (v6e / v7x); safe default False elsewhere."""
    try:
        kind = jax.devices()[0].device_kind.lower()
    except Exception:
        return False
    return any(tag in kind for tag in ("v6", "v7", "trillium"))


def _kernel_folded(x_ref, w1_ref, w2_ref, w3_ref, b3_ref, o_ref):
    # x_ref : (3, TB)   = [x0; x1; ones]           (batch on lanes)
    # w1_ref: (129, 3)  = [[W1 | b1]; [0, 0, 1]]   (last row -> ones row in h1)
    # w2_ref: (256, 129) bf16 = [W2 | b2]
    # w3_ref: (1, 256) bf16 ;  b3_ref: (1, 1) f32 in SMEM
    h1 = jnp.dot(w1_ref[...], x_ref[...], preferred_element_type=jnp.float32)
    h1 = _leaky(h1)                                   # leaky(1) == 1 keeps ones row
    h2 = jnp.dot(w2_ref[...], h1.astype(jnp.bfloat16),
                 preferred_element_type=jnp.float32)  # bias arrives via K=129 column
    h2 = _leaky(h2)
    h3 = jnp.dot(w3_ref[...], h2.astype(jnp.bfloat16),
                 preferred_element_type=jnp.float32) + b3_ref[0, 0]
    o_ref[...] = pl.reciprocal(1.0 + jnp.exp(-h3), approx=True)


def _kernel_unfolded(x_ref, w1_ref, w2_ref, b2_ref, w3_ref, b3_ref, o_ref):
    # Same as above but W2 is (256, 128) and b2 is an explicit (256, 1) f32 add
    # (keeps K=128, native for v5e's 128-deep MXU).
    h1 = jnp.dot(w1_ref[...], x_ref[...], preferred_element_type=jnp.float32)
    h1 = _leaky(h1)
    h2 = jnp.dot(w2_ref[...], h1.astype(jnp.bfloat16),
                 preferred_element_type=jnp.float32) + b2_ref[...]
    h2 = _leaky(h2)
    h3 = jnp.dot(w3_ref[...], h2.astype(jnp.bfloat16),
                 preferred_element_type=jnp.float32) + b3_ref[0, 0]
    o_ref[...] = pl.reciprocal(1.0 + jnp.exp(-h3), approx=True)


def discriminator_forward(img, params, *, batch_tile=2048, fold_b2=None):
    """Mirrors Discriminator.forward: flatten to (B, -1), then the MLP."""
    B = img.shape[0]
    x = img.reshape(B, -1).astype(jnp.float32)            # (B, 2)
    assert x.shape[1] == 2, f"expected 2 features after flatten, got {x.shape[1]}"

    if fold_b2 is None:
        fold_b2 = _mxu_is_256_deep()

    # Params are in native PyTorch nn.Linear layouts: W (out, in), b (out,).
    w1, b1, w2, b2, w3, b3 = params

    # ---- batch-tile selection ----------------------------------------------
    batch_tile = max(_LANE_TILE, _round_up(int(batch_tile), _LANE_TILE))
    B_ceil = _round_up(B, _LANE_TILE)
    TB = min(batch_tile, B_ceil)
    if B_ceil >= 2 * _LANE_TILE:
        # Two-tile floor: keep >= 2 grid steps so v7x megacore has work for both TCs.
        TB = min(TB, _round_up(-(-B_ceil // 2), _LANE_TILE))
    B_pad = _round_up(B, TB)
    grid = (B_pad // TB,)

    # ---- operand prep -------------------------------------------------------
    # Transposed frame (batch on lanes) + ones row so b1 rides the layer-1 matmul.
    xT = jnp.concatenate([x.T, jnp.ones((1, B), jnp.float32)], axis=0)   # (3, B)
    if B_pad != B:
        # Padded lanes are all-zero -> finite bias-only garbage, sliced off below.
        xT = jnp.pad(xT, ((0, 0), (0, B_pad - B)))

    w1a = jnp.concatenate(
        [w1.astype(jnp.float32), b1.reshape(128, 1).astype(jnp.float32)], axis=1)  # (128, 3)
    if fold_b2:
        ones_row = jnp.array([[0.0, 0.0, 1.0]], jnp.float32)
        w1a = jnp.concatenate([w1a, ones_row], axis=0)                    # (129, 3)
        w2a = jnp.concatenate(
            [w2.astype(jnp.float32), b2.reshape(256, 1).astype(jnp.float32)],
            axis=1).astype(jnp.bfloat16)                                  # (256, 129)
    else:
        w2a = w2.astype(jnp.bfloat16)                                     # (256, 128)
        b2c = b2.reshape(256, 1).astype(jnp.float32)
    k1 = w1a.shape[0]                                                     # 128 or 129

    w3r = w3.reshape(1, 256).astype(jnp.bfloat16)                         # (1, 256)
    b3c = b3.reshape(1, 1).astype(jnp.float32)                            # SMEM scalar

    pinned = lambda i: (0, 0)     # weights resident in VMEM across the batch grid
    x_spec = pl.BlockSpec((3, TB), lambda i: (0, i))
    o_spec = pl.BlockSpec((1, TB), lambda i: (0, i))      # lane-dense output

    flops = 2 * B_pad * (3 * k1 + k1 * 256 + 256)
    bytes_accessed = int(xT.size * 4 + w1a.size * 4 + w2a.size * 2
                         + (0 if fold_b2 else 256 * 4) + w3r.size * 2 + 4
                         + B_pad * 4)
    cost = pl.CostEstimate(flops=flops, transcendentals=2 * B_pad,
                           bytes_accessed=bytes_accessed)

    if fold_b2:
        kernel = _kernel_folded
        in_specs = [
            x_spec,
            pl.BlockSpec((k1, 3), pinned),          # [W1 | b1] + ones row
            pl.BlockSpec((256, k1), pinned),        # [W2 | b2]  bf16
            pl.BlockSpec((1, 256), pinned),         # W3 row     bf16
            pl.BlockSpec(memory_space=pltpu.SMEM),  # b3 scalar
        ]
        args = (xT, w1a, w2a, w3r, b3c)
    else:
        kernel = _kernel_unfolded
        in_specs = [
            x_spec,
            pl.BlockSpec((k1, 3), pinned),          # [W1 | b1]
            pl.BlockSpec((256, k1), pinned),        # W2         bf16
            pl.BlockSpec((256, 1), pinned),         # b2
            pl.BlockSpec((1, 256), pinned),         # W3 row     bf16
            pl.BlockSpec(memory_space=pltpu.SMEM),  # b3 scalar
        ]
        args = (xT, w1a, w2a, b2c, w3r, b3c)

    out = pl.pallas_call(
        kernel,
        out_shape=jax.ShapeDtypeStruct((1, B_pad), jnp.float32),
        grid=grid,
        in_specs=in_specs,
        out_specs=o_spec,
        compiler_params=pltpu.CompilerParams(
            dimension_semantics=("parallel",)),
        cost_estimate=cost,
    )(*args)

    return out[0, :B].reshape(B, 1)


def init_params(key):
    """PyTorch-style init and layouts: W (out, in) ~ U(+-1/sqrt(in)), b (out,)."""
    def linear(key, fan_in, fan_out):
        kw, kb = jax.random.split(key)
        bound = 1.0 / jnp.sqrt(fan_in)
        w = jax.random.uniform(kw, (fan_out, fan_in), jnp.float32, -bound, bound)
        b = jax.random.uniform(kb, (fan_out,), jnp.float32, -bound, bound)
        return w, b

    k1, k2, k3 = jax.random.split(key, 3)
    w1, b1 = linear(k1, 2, 128)
    w2, b2 = linear(k2, 128, 256)
    w3, b3 = linear(k3, 256, 1)
    return (w1, b1, w2, b2, w3, b3)


def _reference_forward(img, params):
    """Pure-JAX reference (models the kernel's bf16 layer-2 / layer-3 matmuls)."""
    w1, b1, w2, b2, w3, b3 = params
    x = img.reshape(img.shape[0], -1).astype(jnp.float32)
    h1 = _leaky(x @ w1.T + b1)
    h2 = _leaky(jnp.dot(h1.astype(jnp.bfloat16), w2.T.astype(jnp.bfloat16),
                        preferred_element_type=jnp.float32) + b2)
    h3 = jnp.dot(h2.astype(jnp.bfloat16), w3.T.astype(jnp.bfloat16),
                 preferred_element_type=jnp.float32) + b3
    return jax.nn.sigmoid(h3)


if __name__ == "__main__":
    key = jax.random.PRNGKey(0)
    k_param, k_img, k_img2 = jax.random.split(key, 3)

    params = init_params(k_param)

    # Small case: B=8, 2 total features per sample -> (B, 2, 1, 1); auto fold path.
    B = 8
    img = jax.random.normal(k_img, (B, 2, 1, 1), dtype=jnp.float32)
    out = jax.block_until_ready(discriminator_forward(img, params))
    ref = _reference_forward(img, params)
    assert out.shape == (B, 1)
    assert jnp.allclose(out, ref, atol=5e-3, rtol=5e-3), "mismatch vs reference (B=8)"

    # Larger case exercising the batch grid, tiling/padding (B not a multiple of
    # the lane tile) and both generation-specific kernel variants explicitly
    # (the fold choice is perf-only; both are correct on any TPU generation).
    B2 = 300
    img2 = jax.random.normal(k_img2, (B2, 2), dtype=jnp.float32)
    ref2 = _reference_forward(img2, params)
    for fold in (False, True):
        out2 = jax.block_until_ready(
            discriminator_forward(img2, params, fold_b2=fold))
        assert out2.shape == (B2, 1)
        assert jnp.allclose(out2, ref2, atol=5e-3, rtol=5e-3), (
            f"mismatch vs reference (B=300, fold_b2={fold})")

    print("KERNEL_OK")
</pallas_src>

<mosaic_0001>
module attributes {stable_mosaic.version = 11 : i64} {
  func.func @_kernel_unfolded(%arg0: i32, %arg1: memref<3x256xf32, #tpu.memory_space<vmem>>, %arg2: memref<128x3xf32, #tpu.memory_space<vmem>>, %arg3: memref<256x128xbf16, #tpu.memory_space<vmem>>, %arg4: memref<256x1xf32, #tpu.memory_space<vmem>>, %arg5: memref<1x256xbf16, #tpu.memory_space<vmem>>, %arg6: memref<1x1xf32, #tpu.memory_space<smem>>, %arg7: memref<1x256xf32, #tpu.memory_space<vmem>>) attributes {dimension_semantics = [#tpu.dimension_semantics<parallel>], iteration_bounds = array<i64: 1>, scalar_prefetch = 0 : i64, scratch_operands = 0 : i64, tpu.core_type = #tpu.core_type<tc>, window_params = [{transform_indices = @transform_0, window_bounds = array<i64: 3, 256>}, {pipeline_mode = #tpu.pipeline_mode<synchronous>, transform_indices = @transform_1, window_bounds = array<i64: 128, 3>}, {pipeline_mode = #tpu.pipeline_mode<synchronous>, transform_indices = @transform_2, window_bounds = array<i64: 256, 128>}, {pipeline_mode = #tpu.pipeline_mode<synchronous>, transform_indices = @transform_3, window_bounds = array<i64: 256, 1>}, {pipeline_mode = #tpu.pipeline_mode<synchronous>, transform_indices = @transform_4, window_bounds = array<i64: 1, 256>}, {transform_indices = @transform_5, window_bounds = array<i64: 1, 1>}, {transform_indices = @transform_6, window_bounds = array<i64: 1, 256>}]} {
    %c0 = arith.constant 0 : index
    %c0_0 = arith.constant 0 : index
    %0 = vector.load %arg2[%c0, %c0_0] : memref<128x3xf32, #tpu.memory_space<vmem>>, vector<128x3xf32>
    %c0_1 = arith.constant 0 : index
    %c0_2 = arith.constant 0 : index
    %1 = vector.load %arg1[%c0_1, %c0_2] : memref<3x256xf32, #tpu.memory_space<vmem>>, vector<3x256xf32>
    %cst = arith.constant dense<0.000000e+00> : vector<128x256xf32>
    %2 = tpu.matmul %0, %1, %cst {dimension_numbers = #tpu.dot_dimension_numbers<[1], [0], [0], [1], [0, 0, 1, 1], [], []>} : vector<128x3xf32>, vector<3x256xf32>, vector<128x256xf32> -> vector<128x256xf32>
    %cst_3 = arith.constant 2.000000e-01 : f32
    %3 = vector.broadcast %cst_3 : f32 to vector<128x256xf32>
    %4 = arith.mulf %3, %2 : vector<128x256xf32>
    %5 = arith.maximumf %2, %4 : vector<128x256xf32>
    %c0_4 = arith.constant 0 : index
    %c0_5 = arith.constant 0 : index
    %6 = vector.load %arg3[%c0_4, %c0_5] : memref<256x128xbf16, #tpu.memory_space<vmem>>, vector<256x128xbf16>
    %7 = arith.truncf %5 : vector<128x256xf32> to vector<128x256xbf16>
    %cst_6 = arith.constant dense<0.000000e+00> : vector<256x256xf32>
    %8 = tpu.matmul %6, %7, %cst_6 {dimension_numbers = #tpu.dot_dimension_numbers<[1], [0], [0], [1], [0, 0, 1, 1], [], []>} : vector<256x128xbf16>, vector<128x256xbf16>, vector<256x256xf32> -> vector<256x256xf32>
    %c0_7 = arith.constant 0 : index
    %c0_8 = arith.constant 0 : index
    %9 = vector.load %arg4[%c0_7, %c0_8] : memref<256x1xf32, #tpu.memory_space<vmem>>, vector<256x1xf32>
    %10 = vector.broadcast %9 : vector<256x1xf32> to vector<256x256xf32>
    %11 = arith.addf %8, %10 : vector<256x256xf32>
    %cst_9 = arith.constant 2.000000e-01 : f32
    %12 = vector.broadcast %cst_9 : f32 to vector<256x256xf32>
    %13 = arith.mulf %12, %11 : vector<256x256xf32>
    %14 = arith.maximumf %11, %13 : vector<256x256xf32>
    %c0_10 = arith.constant 0 : index
    %c0_11 = arith.constant 0 : index
    %15 = vector.load %arg5[%c0_10, %c0_11] : memref<1x256xbf16, #tpu.memory_space<vmem>>, vector<1x256xbf16>
    %16 = arith.truncf %14 : vector<256x256xf32> to vector<256x256xbf16>
    %cst_12 = arith.constant dense<0.000000e+00> : vector<1x256xf32>
    %17 = tpu.matmul %15, %16, %cst_12 {dimension_numbers = #tpu.dot_dimension_numbers<[1], [0], [0], [1], [0, 0, 1, 1], [], []>} : vector<1x256xbf16>, vector<256x256xbf16>, vector<1x256xf32> -> vector<1x256xf32>
    %c0_13 = arith.constant 0 : index
    %c0_14 = arith.constant 0 : index
    %18 = memref.load %arg6[%c0_13, %c0_14] : memref<1x1xf32, #tpu.memory_space<smem>>
    %19 = vector.broadcast %18 : f32 to vector<1x256xf32>
    %20 = arith.addf %17, %19 : vector<1x256xf32>
    %cst_15 = arith.constant 0.000000e+00 : f32
    %21 = vector.broadcast %cst_15 : f32 to vector<1x256xf32>
    %22 = arith.subf %21, %20 : vector<1x256xf32>
    %23 = math.exp %22 : vector<1x256xf32>
    %cst_16 = arith.constant 1.000000e+00 : f32
    %24 = vector.broadcast %cst_16 : f32 to vector<1x256xf32>
    %25 = arith.addf %24, %23 : vector<1x256xf32>
    %26 = tpu.reciprocal %25 {approx = true} : vector<1x256xf32> -> vector<1x256xf32>
    %c0_17 = arith.constant 0 : index
    %c0_18 = arith.constant 0 : index
    %27 = vector.load %arg7[%c0_17, %c0_18] : memref<1x256xf32, #tpu.memory_space<vmem>>, vector<1x256xf32>
    tpu.vector_store %arg7[%c0_17, %c0_18], %26 {strides = array<i32>} : memref<1x256xf32, #tpu.memory_space<vmem>>, vector<1x256xf32>,
    return
  }
  func.func @transform_0(%arg0: i32) -> (i32, i32) {
    %c0_i32 = arith.constant 0 : i32
    %c0_i32_0 = arith.constant 0 : i32
    return %c0_i32, %arg0 : i32, i32
  }
  func.func @transform_1(%arg0: i32) -> (i32, i32) {
    %c0_i32 = arith.constant 0 : i32
    %c0_i32_0 = arith.constant 0 : i32
    %c0_i32_1 = arith.constant 0 : i32
    return %c0_i32, %c0_i32_0 : i32, i32
  }
  func.func @transform_2(%arg0: i32) -> (i32, i32) {
    %c0_i32 = arith.constant 0 : i32
    %c0_i32_0 = arith.constant 0 : i32
    %c0_i32_1 = arith.constant 0 : i32
    return %c0_i32, %c0_i32_0 : i32, i32
  }
  func.func @transform_3(%arg0: i32) -> (i32, i32) {
    %c0_i32 = arith.constant 0 : i32
    %c0_i32_0 = arith.constant 0 : i32
    %c0_i32_1 = arith.constant 0 : i32
    return %c0_i32, %c0_i32_0 : i32, i32
  }
  func.func @transform_4(%arg0: i32) -> (i32, i32) {
    %c0_i32 = arith.constant 0 : i32
    %c0_i32_0 = arith.constant 0 : i32
    %c0_i32_1 = arith.constant 0 : i32
    return %c0_i32, %c0_i32_0 : i32, i32
  }
  func.func @transform_5(%arg0: i32) -> (i32, i32) {
    %c0_i32 = arith.constant 0 : i32
    %c0_i32_0 = arith.constant 0 : i32
    %c0_i32_1 = arith.constant 0 : i32
    return %c0_i32, %c0_i32_0 : i32, i32
  }
  func.func @transform_6(%arg0: i32) -> (i32, i32) {
    %c0_i32 = arith.constant 0 : i32
    %c0_i32_0 = arith.constant 0 : i32
    return %c0_i32, %arg0 : i32, i32
  }
}

</mosaic_0001>

<bundles_post_ra>
// kernel: tpu_custom_call.1
= control target key start
LH: loop header
LB: loop body
LE: loop exit
PB: predicated region body
PF: predicated region fallthrough
CT: control target
= control target key end

     0   :  { %vm94_vm0 = vcmask 1042432   ;;  %v1217_v2 = vmov 0.0   ;;  %vm45_vm1 = vcmask 23552   ;;  %s1776_s0 = inlined_call_operand.vmem [shape: f32[3,256], index: 0, kind: input, shape index: {}]   ;;  %s1777_s1 = inlined_call_operand.vmem [shape: f32[128,3], index: 1, kind: input, shape index: {}]   ;;  %s1778_s2 = inlined_call_operand.vmem [shape: bf16[256,128], index: 2, kind: input, shape index: {}]   ;;  %s1779_s3 = inlined_call_operand.vmem [shape: f32[256,1], index: 3, kind: input, shape index: {}]   ;;  %s1780_s4 = inlined_call_operand.vmem [shape: bf16[1,256], index: 4, kind: input, shape index: {}]   ;;  %s1781_s5 = inlined_call_operand.<no memory space> [shape: f32[1,1], index: 5, kind: input, shape index: {}]   ;;  %s1782_s6 = inlined_call_operand.hbm [shape: f32[1,256], index: 6, kind: output, shape index: {}]  }
   0x1   :  { %v42_v0 = vld [vmem:[%s1776_s0] sm:$0x77]  ;;  %163 = vmatprep.mubr.f32.mxu0 %v1217_v2  ;;  %v27_v4 = vld [vmem:[%s1777_s1 + $0x8] sm:$0xff]  ;;  %v28_v5 = vld [vmem:[%s1777_s1 + $0x10] sm:$0xff] }
   0x2   :  { %v44_v1 = vcombine.high %v42_v0, %v42_v0  ;;  %v26_v3 = vld [vmem:[%s1777_s1] sm:$0xff]  ;;  %v29_v6 = vld [vmem:[%s1777_s1 + $0x18] sm:$0xff] }
   0x4   :  { %1129 = vmatprep.subr.msk.mxu0 %vm94_vm0, %v44_v1 }
   0x5   :  { %1130 = vmatpush1.msk.msra.mxu0 %vm94_vm0, %v42_v0 }
   0x6   :  { %1131 = vmatmul.mubr.msk.f32.vlgmr.msra.gmra.mxu0 %vm45_vm1, %v26_v3 }
   0x7   :  { %169 = vmatprep.mubr.f32.mxu0 %v1217_v2 }
   0xa   :  { %1132 = vmatmul.mubr.msk.f32.gmra.mxu0 %vm45_vm1, %v27_v4 }
   0xb   :  { %175 = vmatprep.mubr.f32.mxu0 %v1217_v2 }
   0xe   :  { %1133 = vmatmul.mubr.msk.f32.gmra.mxu0 %vm45_vm1, %v28_v5 }
   0xf   :  { %181 = vmatprep.mubr.f32.mxu0 %v1217_v2 }
  0x10   :  { %12 = vsyncpa [#allocation4], 0  ;;  %v30_v7 = vld [vmem:[%s1777_s1 + $0x20] sm:$0xff]  ;;  %v31_v8 = vld [vmem:[%s1777_s1 + $0x28] sm:$0xff]  ;;  %v1218_v19 = vmov 0  }
  0x11   :  { %v32_v9 = vld [vmem:[%s1777_s1 + $0x30] sm:$0xff]  ;;  %v33_v10 = vld [vmem:[%s1777_s1 + $0x38] sm:$0xff]  ;;  %v34_v11 = vld [vmem:[%s1777_s1 + $0x40] sm:$0xff]  ;;  %692 = vmatprep.mubr.bf16.mxu1 %v1218_v19  ;;  %1168 = vset.pattern.permute.xlu0 %v1218_v19 }
  0x12   :  { %1134 = vmatmul.mubr.msk.f32.gmra.mxu0 %vm45_vm1, %v29_v6  ;;  %v35_v12 = vld [vmem:[%s1777_s1 + $0x48] sm:$0xff]  ;;  %v36_v13 = vld [vmem:[%s1777_s1 + $0x50] sm:$0xff]  ;;  %v37_v14 = vld [vmem:[%s1777_s1 + $0x58] sm:$0xff]  ;;  %1169 = vset.pattern.permute.xlu1 %v1218_v19 }
  0x13   :  { %187 = vmatprep.mubr.f32.mxu0 %v1217_v2  ;;  %v38_v15 = vld [vmem:[%s1777_s1 + $0x60] sm:$0xff]  ;;  %v39_v16 = vld [vmem:[%s1777_s1 + $0x68] sm:$0xff]  ;;  %v40_v17 = vld [vmem:[%s1777_s1 + $0x70] sm:$0xff] }
  0x14   :  { %v41_v18 = vld [vmem:[%s1777_s1 + $0x78] sm:$0xff]  ;;  %v386_v40 = vld [vmem:[%s1779_s3 + $0x70] sm:$0xff]  ;;  %v384_v41 = vld [vmem:[%s1779_s3 + $0x60] sm:$0xff] }
  0x15   :  { %476 = vperm.xlu0 %1168, %v386_v40   ;;  %466 = vperm.xlu1 %1169, %v384_v41   ;;  %v387_v46 = vld [vmem:[%s1779_s3 + $0x78] sm:$0xff]  ;;  %v385_v56 = vld [vmem:[%s1779_s3 + $0x68] sm:$0xff]  ;;  %v382_v57 = vld [vmem:[%s1779_s3 + $0x50] sm:$0xff] }
  0x16   :  { %1135 = vmatmul.mubr.msk.f32.gmra.mxu0 %vm45_vm1, %v30_v7  ;;  %v383_v61 = vld [vmem:[%s1779_s3 + $0x58] sm:$0xff]  ;;  %v380_v62 = vld [vmem:[%s1779_s3 + $0x40] sm:$0xff]  ;;  %v381_v3 = vld [vmem:[%s1779_s3 + $0x48] sm:$0xff] }
  0x17   :  { %193 = vmatprep.mubr.f32.mxu0 %v1217_v2  ;;  %v378_v4 = vld [vmem:[%s1779_s3 + $0x30] sm:$0xff]  ;;  %v379_v6 = vld [vmem:[%s1779_s3 + $0x38] sm:$0xff]  ;;  %v376_v7 = vld [vmem:[%s1779_s3 + $0x20] sm:$0xff] }
  0x19   :  { %481 = vperm.xlu0 %1168, %v387_v46   ;;  %471 = vperm.xlu1 %1169, %v385_v56  }
  0x1a   :  { %1136 = vmatmul.mubr.msk.f32.gmra.mxu0 %vm45_vm1, %v31_v8 }
  0x1b   :  { %199 = vmatprep.mubr.f32.mxu0 %v1217_v2 }
  0x1d   :  { %456 = vperm.xlu0 %1168, %v382_v57   ;;  %461 = vperm.xlu1 %1169, %v383_v61  }
  0x1e   :  { %1137 = vmatmul.mubr.msk.f32.gmra.mxu0 %vm45_vm1, %v32_v9 }
  0x1f   :  { %205 = vmatprep.mubr.f32.mxu0 %v1217_v2 }
  0x21   :  { %446 = vperm.xlu0 %1168, %v380_v62   ;;  %451 = vperm.xlu1 %1169, %v381_v3  }
  0x22   :  { %1138 = vmatmul.mubr.msk.f32.gmra.mxu0 %vm45_vm1, %v33_v10 }
  0x23   :  { %211 = vmatprep.mubr.f32.mxu0 %v1217_v2 }
  0x25   :  { %436 = vperm.xlu0 %1168, %v378_v4   ;;  %441 = vperm.xlu1 %1169, %v379_v6  }
  0x26   :  { %1139 = vmatmul.mubr.msk.f32.gmra.mxu0 %vm45_vm1, %v34_v11  ;;  %v377_v11 = vld [vmem:[%s1779_s3 + $0x28] sm:$0xff] }
  0x27   :  { %217 = vmatprep.mubr.f32.mxu0 %v1217_v2 }
  0x29   :  { %426 = vperm.xlu0 %1168, %v376_v7   ;;  %431 = vperm.xlu1 %1169, %v377_v11  }
  0x2a   :  { %1140 = vmatmul.mubr.msk.f32.gmra.mxu0 %vm45_vm1, %v35_v12  ;;  %v374_v12 = vld [vmem:[%s1779_s3 + $0x10] sm:$0xff] }
  0x2b   :  { %223 = vmatprep.mubr.f32.mxu0 %v1217_v2 }
  0x2d   :  { %416 = vperm.xlu0 %1168, %v374_v12  }
  0x2e   :  { %1141 = vmatmul.mubr.msk.f32.gmra.mxu0 %vm45_vm1, %v36_v13 }
  0x2f   :  { %229 = vmatprep.mubr.f32.mxu0 %v1217_v2 }
  0x32   :  { %1142 = vmatmul.mubr.msk.f32.gmra.mxu0 %vm45_vm1, %v37_v14  ;;  %v375_v14 = vld [vmem:[%s1779_s3 + $0x18] sm:$0xff] }
  0x33   :  { %235 = vmatprep.mubr.f32.mxu0 %v1217_v2  ;;  %421 = vperm.xlu1 %1169, %v375_v14  }
  0x36   :  { %1143 = vmatmul.mubr.msk.f32.gmra.mxu0 %vm45_vm1, %v38_v15  ;;  %v372_v15 = vld [vmem:[%s1779_s3] sm:$0xff] }
  0x37   :  { %241 = vmatprep.mubr.f32.mxu0 %v1217_v2  ;;  %406 = vperm.xlu0 %1168, %v372_v15  }
  0x3a   :  { %1144 = vmatmul.mubr.msk.f32.gmra.mxu0 %vm45_vm1, %v39_v16 }
  0x3b   :  { %247 = vmatprep.mubr.f32.mxu0 %v1217_v2 }
  0x3e   :  { %1145 = vmatmul.mubr.msk.f32.gmra.mxu0 %vm45_vm1, %v40_v17 }
  0x3f   :  { %253 = vmatprep.mubr.f32.mxu0 %v1217_v2 }
  0x42   :  { %1146 = vmatmul.mubr.msk.f32.gmra.mxu0 %vm45_vm1, %v41_v18 }
  0xc6   :  { %v165_v20 = vpop.f32.mrf.mxu0 }
  0xc7   :  { %v260_v22 = vmul.f32 0.2, %v165_v20 }
  0xc8   :  { %v167_v21 = vpop.f32.mrf.mxu0 }
  0xc9   :  { %v261_v24 = vmul.f32 0.2, %v167_v21  ;;  %v292_v27 = vmax.f32 %v165_v20, %v260_v22  ;;  %v373_v20 = vld [vmem:[%s1779_s3 + $0x8] sm:$0xff] }
  0xca   :  { %v171_v23 = vpop.f32.mrf.mxu0  ;;  %411 = vperm.xlu1 %1169, %v373_v20  }
  0xcb   :  { %v262_v25 = vmul.f32 0.2, %v171_v23  ;;  %v293_v31 = vmax.f32 %v167_v21, %v261_v24 }
  0xcc   :  { %v173_v26 = vpop.f32.mrf.mxu0 }
  0xcd   :  { %v294_v28 = vmax.f32 %v171_v23, %v262_v25  ;;  %v263_v29 = vmul.f32 0.2, %v173_v26 }
  0xce   :  { %v177_v30 = vpop.f32.mrf.mxu0 }
  0xcf   :  { %v1326_v32 = vpack.c.bf16 %v294_v28, %v292_v27  ;;  %v295_v33 = vmax.f32 %v173_v26, %v263_v29  ;;  %v264_v36 = vmul.f32 0.2, %v177_v30 }
  0xd0   :  { %v179_v34 = vpop.f32.mrf.mxu0 }
  0xd1   :  { %v1328_v35 = vpack.c.bf16 %v295_v33, %v293_v31  ;;  %v265_v38 = vmul.f32 0.2, %v179_v34  ;;  %v296_v43 = vmax.f32 %v177_v30, %v264_v36 }
  0xd2   :  { %v183_v37 = vpop.f32.mrf.mxu0 }
  0xd3   :  { %v266_v39 = vmul.f32 0.2, %v183_v37  ;;  %v297_v48 = vmax.f32 %v179_v34, %v265_v38 }
  0xd4   :  { %v185_v42 = vpop.f32.mrf.mxu0 }
  0xd5   :  { %v298_v44 = vmax.f32 %v183_v37, %v266_v39  ;;  %v267_v45 = vmul.f32 0.2, %v185_v42 }
  0xd6   :  { %v189_v47 = vpop.f32.mrf.mxu0 }
  0xd7   :  { %v1339_v49 = vpack.c.bf16 %v298_v44, %v296_v43  ;;  %v299_v50 = vmax.f32 %v185_v42, %v267_v45  ;;  %v268_v53 = vmul.f32 0.2, %v189_v47 }
  0xd8   :  { %v1341_v51 = vpop.f32.mrf.mxu0 }
  0xd9   :  { %v1343_v52 = vpack.c.bf16 %v299_v50, %v297_v48  ;;  %v300_v59 = vmax.f32 %v189_v47, %v268_v53 }
  0xda   :  { %v195_v54 = vpop.f32.mrf.mxu0 }
  0xdb   :  { %v270_v55 = vmul.f32 0.2, %v195_v54 }
  0xdc   :  { %v1351_v58 = vpop.f32.mrf.mxu0 }
  0xdd   :  { %v302_v60 = vmax.f32 %v195_v54, %v270_v55 }
  0xde   :  { %v1359_v63 = vpop.f32.mrf.mxu0 }
  0xdf   :  { %v1361_v0 = vpack.c.bf16 %v302_v60, %v300_v59 }
  0xe0   :  { %v1363_v1 = vpop.f32.mrf.mxu0 }
  0xe1   :  { %v273_v20 = vmul.f32 0.2, %v1363_v1 }
  0xe2   :  { %v1365_v2 = vpop.f32.mrf.mxu0 }
  0xe4   :  { %v1373_v5 = vpop.f32.mrf.mxu0 }
  0xe5   :  { %v275_v7 = vmul.f32 0.2, %v1373_v5 }
  0xe6   :  { %v1381_v8 = vpop.f32.mrf.mxu0 }
  0xe7   :  { %v276_v14 = vmul.f32 0.2, %v1381_v8 }
  0xe8   :  { %v1383_v9 = vpop.f32.mrf.mxu0 }
  0xe9   :  { %v277_v61 = vmul.f32 0.2, %v1383_v9 }
  0xea   :  { %v1385_v10 = vpop.f32.mrf.mxu0 }
  0xeb   :  { %v278_v3 = vmul.f32 0.2, %v1385_v10 }
  0xec   :  { %v1393_v13 = vpop.f32.mrf.mxu0 }
  0xed   :  { %v279_v55 = vmul.f32 0.2, %v1393_v13 }
  0xee   :  { %v225_v16 = vpop.f32.mrf.mxu0 }
  0xef   :  { %v280_v59 = vmul.f32 0.2, %v225_v16  ;;  %v311_v11 = vmax.f32 %v1393_v13, %v279_v55  ;;  %v1183_v55 = vld [vmem:[%s1778_s2 + $0x60] sm:$0xff]  }
  0xf0   :  { %v227_v17 = vpop.f32.mrf.mxu0 }
  0xf1   :  { %v281_v46 = vmul.f32 0.2, %v227_v17  ;;  %v312_v15 = vmax.f32 %v225_v16, %v280_v59  ;;  %v402_v16 = vld [vmem:[%s1779_s3 + $0xf0] sm:$0xff]  ;;  %v1186_v59 = vld [vmem:[%s1778_s2 + $0x78] sm:$0xff]  }
  0xf2   :  { %v231_v18 = vpop.f32.mrf.mxu0  ;;  %556 = vperm.xlu0 %1168, %v402_v16  }
  0xf3   :  { %v282_v50 = vmul.f32 0.2, %v231_v18  ;;  %v313_v62 = vmax.f32 %v227_v17, %v281_v46  ;;  %v274_v17 = vmul.f32 0.2, %v1365_v2  ;;  %v1177_v46 = vld [vmem:[%s1778_s2 + $0x30] sm:$0xff]  }
  0xf4   :  { %v233_v21 = vpop.f32.mrf.mxu0 }
  0xf5   :  { %v283_v40 = vmul.f32 0.2, %v233_v21  ;;  %v314_v4 = vmax.f32 %v231_v18, %v282_v50  ;;  %v1180_v50 = vld [vmem:[%s1778_s2 + $0x48] sm:$0xff]  }
  0xf6   :  { %v237_v22 = vpop.f32.mrf.mxu0 }
  0xf7   :  { %v284_v44 = vmul.f32 0.2, %v237_v22  ;;  %v315_v56 = vmax.f32 %v233_v21, %v283_v40  ;;  %v309_v21 = vmax.f32 %v1383_v9, %v277_v61  ;;  %v366_v18 = vpack.c.bf16 %v314_v4, %v312_v15  ;;  %v1172_v40 = vld [vmem:[%s1778_s2 + $0x8] sm:$0xff]   ;;  %v1542_v61 = vpop.permute.xlu1 %466 }
  0xf8   :  { %v239_v23 = vpop.f32.mrf.mxu0  ;;  %v272_v9 = vmul.f32 0.2, %v1359_v63 }
  0xf9   :  { %v285_v36 = vmul.f32 0.2, %v239_v23  ;;  %v316_v60 = vmax.f32 %v237_v22, %v284_v44  ;;  %v367_v12 = vpack.c.bf16 %v315_v56, %v313_v62  ;;  %v310_v22 = vmax.f32 %v1385_v10, %v278_v3  ;;  %v1175_v44 = vld [vmem:[%s1778_s2 + $0x20] sm:$0xff]   ;;  %v1184_v56 = vld [vmem:[%s1778_s2 + $0x68] sm:$0xff]  }
  0xfa   :  { %v243_v24 = vpop.f32.mrf.mxu0  ;;  %v365_v13 = vpack.c.bf16 %v311_v11, %v309_v21  ;;  %v269_v10 = vmul.f32 0.2, %v1341_v51 }
  0xfb   :  { %v286_v38 = vmul.f32 0.2, %v243_v24  ;;  %v317_v47 = vmax.f32 %v239_v23, %v285_v36  ;;  %v271_v23 = vmul.f32 0.2, %v1351_v58  ;;  %v401_v36 = vld [vmem:[%s1779_s3 + $0xe8] sm:$0xff]  ;;  %v1546_v3 = vpop.permute.xlu1 %471 }
  0xfc   :  { %v245_v25 = vpop.f32.mrf.mxu0 }
  0xfd   :  { %v287_v29 = vmul.f32 0.2, %v245_v25  ;;  %v318_v53 = vmax.f32 %v243_v24, %v286_v38  ;;  %v307_v24 = vmax.f32 %v1373_v5, %v275_v7  ;;  %v400_v5 = vld [vmem:[%s1779_s3 + $0xe0] sm:$0xff] }
  0xfe   :  { %v249_v26 = vpop.f32.mrf.mxu0  ;;  %546 = vperm.xlu0 %1168, %v400_v5   ;;  %v1171_v38 = vld [vmem:[%s1778_s2] sm:$0xff]  }
  0xff   :  { %v288_v33 = vmul.f32 0.2, %v249_v26  ;;  %v319_v41 = vmax.f32 %v245_v25, %v287_v29  ;;  %v368_v6 = vpack.c.bf16 %v318_v53, %v316_v60  ;;  %v403_v25 = vld [vmem:[%s1779_s3 + $0xf8] sm:$0xff]  ;;  %v1181_v53 = vld [vmem:[%s1778_s2 + $0x50] sm:$0xff]   ;;  %v1540_v60 = vpop.permute.xlu0 %476 }
 0x100   :  { %v251_v27 = vpop.f32.mrf.mxu0  ;;  %561 = vperm.xlu1 %1169, %v403_v25  }
 0x101   :  { %v289_v30 = vmul.f32 0.2, %v251_v27  ;;  %v320_v45 = vmax.f32 %v249_v26, %v288_v33  ;;  %v369_v57 = vpack.c.bf16 %v319_v41, %v317_v47  ;;  %v308_v26 = vmax.f32 %v1381_v8, %v276_v14  ;;  %v389_v41 = vld [vmem:[%s1779_s3 + $0x88] sm:$0xff]  ;;  %v1178_v47 = vld [vmem:[%s1778_s2 + $0x38] sm:$0xff]  }
 0x102   :  { %v255_v28 = vpop.f32.mrf.mxu0  ;;  %v304_v8 = vmax.f32 %v1359_v63, %v272_v9  ;;  %v301_v33 = vmax.f32 %v1341_v51, %v269_v10  ;;  %v396_v51 = vld [vmem:[%s1779_s3 + $0xc0] sm:$0xff]  ;;  %v397_v63 = vld [vmem:[%s1779_s3 + $0xc8] sm:$0xff] }
 0x103   :  { %v290_v31 = vmul.f32 0.2, %v255_v28  ;;  %v321_v42 = vmax.f32 %v251_v27, %v289_v30  ;;  %v305_v27 = vmax.f32 %v1363_v1, %v273_v20  ;;  %v364_v29 = vpack.c.bf16 %v310_v22, %v308_v26  ;;  %v1544_v62 = vpop.permute.xlu0 %481 }
 0x104   :  { %v257_v34 = vpop.f32.mrf.mxu0  ;;  %v303_v30 = vmax.f32 %v1351_v58, %v271_v23  ;;  %551 = vperm.xlu1 %1169, %v401_v36   ;;  %v399_v58 = vld [vmem:[%s1779_s3 + $0xd8] sm:$0xff] }
 0x105   :  { %v291_v37 = vmul.f32 0.2, %v257_v34  ;;  %v322_v39 = vmax.f32 %v255_v28, %v290_v31  ;;  %v306_v28 = vmax.f32 %v1365_v2, %v274_v17  ;;  %v363_v31 = vpack.c.bf16 %v307_v24, %v305_v27  ;;  %v398_v2 = vld [vmem:[%s1779_s3 + $0xd0] sm:$0xff] }
 0x106   :  { %536 = vperm.xlu0 %1168, %v398_v2  }
 0x107   :  { %v323_v43 = vmax.f32 %v257_v34, %v291_v37  ;;  %v370_v54 = vpack.c.bf16 %v322_v39, %v320_v45  ;;  %v362_v1 = vpack.c.bf16 %v306_v28, %v304_v8  ;;  %v361_v34 = vpack.c.bf16 %v303_v30, %v301_v33  ;;  %v394_v37 = vld [vmem:[%s1779_s3 + $0xb0] sm:$0xff]  ;;  %v391_v39 = vld [vmem:[%s1779_s3 + $0x98] sm:$0xff]  ;;  %v1176_v45 = vld [vmem:[%s1778_s2 + $0x28] sm:$0xff]   ;;  %v1548_v4 = vpop.permute.xlu0 %456 }
 0x108   :  { %541 = vperm.xlu1 %1169, %v399_v58  }
 0x109   :  { %v371_v48 = vpack.c.bf16 %v323_v43, %v321_v42  ;;  %v1173_v42 = vld [vmem:[%s1778_s2 + $0x10] sm:$0xff]   ;;  %v1174_v43 = vld [vmem:[%s1778_s2 + $0x18] sm:$0xff]  }
 0x10a   :  { %526 = vperm.xlu0 %1168, %v396_v51  }
 0x10b   :  { %660 = vmatprep.subr.bf16.mxu1 %v371_v48  ;;  %v1179_v48 = vld [vmem:[%s1778_s2 + $0x40] sm:$0xff]   ;;  %v1552_v7 = vpop.permute.xlu0 %446 }
 0x10c   :  { %661 = vmatpush1.bf16.msra.mxu1 %v370_v54  ;;  %531 = vperm.xlu1 %1169, %v397_v63   ;;  %v1182_v54 = vld [vmem:[%s1778_s2 + $0x58] sm:$0xff]  }
 0x10d   :  { %662 = vmatprep.subr.bf16.mxu1 %v369_v57  ;;  %v1185_v57 = vld [vmem:[%s1778_s2 + $0x70] sm:$0xff]  }
 0x10e   :  { %516 = vperm.xlu0 %1168, %v394_v37  }
 0x10f   :  { %v1556_v11 = vpop.permute.xlu0 %436 }
 0x110   :  { %663 = vmatpush1.bf16.msra.mxu1 %v368_v6  ;;  %v1550_v6 = vpop.permute.xlu1 %461 }
 0x111   :  { %664 = vmatprep.subr.bf16.mxu1 %v367_v12 }
 0x113   :  { %v1560_v14 = vpop.permute.xlu0 %426 }
 0x114   :  { %665 = vmatpush1.bf16.msra.mxu1 %v366_v18 }
 0x115   :  { %666 = vmatprep.subr.bf16.mxu1 %v365_v13 }
 0x117   :  { %v417_v20 = vpop.permute.xlu0 %416 }
 0x118   :  { %667 = vmatpush1.bf16.msra.mxu1 %v364_v29 }
 0x119   :  { %668 = vmatprep.subr.bf16.mxu1 %v363_v31 }
 0x11b   :  { %v407_v17 = vpop.permute.xlu0 %406 }
 0x11c   :  { %669 = vmatpush1.bf16.msra.mxu1 %v362_v1 }
 0x11d   :  { %670 = vmatprep.subr.bf16.mxu1 %v361_v34 }
 0x120   :  { %671 = vmatpush1.bf16.msra.mxu1 %v1361_v0  ;;  %v395_v0 = vld [vmem:[%s1779_s3 + $0xb8] sm:$0xff] }
 0x121   :  { %672 = vmatprep.subr.bf16.mxu1 %v1343_v52  ;;  %v392_v52 = vld [vmem:[%s1779_s3 + $0xa0] sm:$0xff]  ;;  %521 = vperm.xlu1 %1169, %v395_v0  }
 0x122   :  { %506 = vperm.xlu0 %1168, %v392_v52  }
 0x124   :  { %673 = vmatpush1.bf16.msra.mxu1 %v1339_v49  ;;  %v390_v49 = vld [vmem:[%s1779_s3 + $0x90] sm:$0xff] }
 0x125   :  { %674 = vmatprep.subr.bf16.mxu1 %v1328_v35  ;;  %v393_v35 = vld [vmem:[%s1779_s3 + $0xa8] sm:$0xff] }
 0x126   :  { %511 = vperm.xlu1 %1169, %v393_v35   ;;  %496 = vperm.xlu0 %1168, %v390_v49  }
 0x128   :  { %675 = vmatpush1.bf16.msra.mxu1 %v1326_v32  ;;  %v388_v32 = vld [vmem:[%s1779_s3 + $0x80] sm:$0xff] }
 0x12a   :  { %501 = vperm.xlu1 %1169, %v391_v39   ;;  %486 = vperm.xlu0 %1168, %v388_v32  }
 0x12b   :  { %693 = vmatmul.mubr.bf16.vlgmr.msra.gmra.mxu1 %v1171_v38 }
 0x12c   :  { %702 = vmatprep.mubr.bf16.mxu1 %v1218_v19 }
 0x12e   :  { %491 = vperm.xlu1 %1169, %v389_v41  }
 0x133   :  { %703 = vmatmul.mubr.bf16.gmra.mxu1 %v1172_v40 }
 0x134   :  { %712 = vmatprep.mubr.bf16.mxu1 %v1218_v19 }
 0x13b   :  { %713 = vmatmul.mubr.bf16.gmra.mxu1 %v1173_v42 }
 0x13c   :  { %722 = vmatprep.mubr.bf16.mxu1 %v1218_v19 }
 0x143   :  { %723 = vmatmul.mubr.bf16.gmra.mxu1 %v1174_v43 }
 0x144   :  { %732 = vmatprep.mubr.bf16.mxu1 %v1218_v19 }
 0x14b   :  { %733 = vmatmul.mubr.bf16.gmra.mxu1 %v1175_v44 }
 0x14c   :  { %742 = vmatprep.mubr.bf16.mxu1 %v1218_v19 }
 0x153   :  { %743 = vmatmul.mubr.bf16.gmra.mxu1 %v1176_v45 }
 0x154   :  { %752 = vmatprep.mubr.bf16.mxu1 %v1218_v19 }
 0x15b   :  { %753 = vmatmul.mubr.bf16.gmra.mxu1 %v1177_v46 }
 0x15c   :  { %762 = vmatprep.mubr.bf16.mxu1 %v1218_v19 }
 0x163   :  { %763 = vmatmul.mubr.bf16.gmra.mxu1 %v1178_v47 }
 0x164   :  { %772 = vmatprep.mubr.bf16.mxu1 %v1218_v19 }
 0x16b   :  { %773 = vmatmul.mubr.bf16.gmra.mxu1 %v1179_v48 }
 0x16c   :  { %782 = vmatprep.mubr.bf16.mxu1 %v1218_v19 }
 0x16d   :  { %v1572_v46 = vpop.permute.xlu0 %556 }
 0x16e   :  { %1800 = vst [vmem:[#allocation7_spill] sm:$0xff] %v1572_v46 }
 0x173   :  { %783 = vmatmul.mubr.bf16.gmra.mxu1 %v1180_v50 }
 0x174   :  { %792 = vmatprep.mubr.bf16.mxu1 %v1218_v19 }
 0x17b   :  { %793 = vmatmul.mubr.bf16.gmra.mxu1 %v1181_v53 }
 0x17c   :  { %802 = vmatprep.mubr.bf16.mxu1 %v1218_v19 }
 0x183   :  { %803 = vmatmul.mubr.bf16.gmra.mxu1 %v1182_v54 }
 0x184   :  { %812 = vmatprep.mubr.bf16.mxu1 %v1218_v19 }
 0x18b   :  { %813 = vmatmul.mubr.bf16.gmra.mxu1 %v1183_v55  ;;  %v1580_v55 = vpop.permute.xlu0 %546 }
 0x18c   :  { %822 = vmatprep.mubr.bf16.mxu1 %v1218_v19  ;;  %1802 = vst [vmem:[#allocation9_spill] sm:$0xff] %v1580_v55 }
 0x193   :  { %823 = vmatmul.mubr.bf16.gmra.mxu1 %v1184_v56 }
 0x194   :  { %832 = vmatprep.mubr.bf16.mxu1 %v1218_v19 }
 0x19b   :  { %833 = vmatmul.mubr.bf16.gmra.mxu1 %v1185_v57 }
 0x19c   :  { %842 = vmatprep.mubr.bf16.mxu1 %v1218_v19  ;;  %v1554_v19 = vpop.permute.xlu1 %451 }
 0x1a0   :  { %v1558_v12 = vpop.permute.xlu1 %441 }
 0x1a3   :  { %843 = vmatmul.mubr.bf16.gmra.mxu1 %v1186_v59 }
 0x1a4   :  { %v1562_v15 = vpop.permute.xlu1 %431 }
 0x1a8   :  { %v422_v21 = vpop.permute.xlu1 %421 }
 0x1ac   :  { %v412_v24 = vpop.permute.xlu1 %411 }
 0x1b0   :  { %v1578_v53 = vpop.permute.xlu1 %561 }
 0x1b1   :  { %1801 = vst [vmem:[#allocation8_spill] sm:$0xff] %v1578_v53 }
 0x1b4   :  { %v1582_v59 = vpop.permute.xlu1 %551 }
 0x1b5   :  { %1803 = vst [vmem:[#allocation10_spill] sm:$0xff] %v1582_v59 }
 0x1eb   :  { %v694_v22 = vpop.f32.mrf.mxu1 }
 0x1ec   :  { %v695_v18 = vadd.f32 %v694_v22, %v407_v17 }
 0x1ed   :  { %v696_v23 = vpop.f32.mrf.mxu1 }
 0x1ee   :  { %v697_v13 = vadd.f32 %v696_v23, %v407_v17  ;;  %v853_v25 = vmul.f32 0.2, %v695_v18 }
 0x1ef   :  { %v698_v16 = vpop.f32.mrf.mxu1 }
 0x1f0   :  { %v699_v9 = vadd.f32 %v698_v16, %v412_v24  ;;  %v854_v10 = vmul.f32 0.2, %v697_v13  ;;  %v917_v29 = vmax.f32 %v695_v18, %v853_v25  ;;  %v1584_v18 = vpop.permute.xlu0 %536 }
 0x1f1   :  { %v700_v26 = vpop.f32.mrf.mxu1  ;;  %1804 = vst [vmem:[#allocation11_spill] sm:$0xff] %v1584_v18 }
 0x1f2   :  { %v855_v27 = vmul.f32 0.2, %v699_v9  ;;  %v701_v5 = vadd.f32 %v700_v26, %v412_v24  ;;  %v918_v1 = vmax.f32 %v697_v13, %v854_v10  ;;  %v1590_v24 = vld.sshfl [vmem:[%s1780_s4] sm:$0x11 pattern:$0x75316420]  ;;  %v1594_v26 = vpop.permute.xlu1 %541 }
 0x1f3   :  { %v704_v28 = vpop.f32.mrf.mxu1  ;;  %1805 = vst [vmem:[#allocation12_spill] sm:$0xff] %v1590_v24  ;;  %v1024_v25 = vcombine.high %v1590_v24, %v1590_v24  ;;  %1806 = vst [vmem:[#allocation13_spill] sm:$0xff] %v1594_v26 }
 0x1f4   :  { %v919_v30 = vmax.f32 %v699_v9, %v855_v27  ;;  %v856_v31 = vmul.f32 0.2, %v701_v5  ;;  %v705_v8 = vadd.f32 %v704_v28, %v417_v20 }
 0x1f5   :  { %v706_v33 = vpop.f32.mrf.mxu1 }
 0x1f6   :  { %v1564_v34 = vpack.c.bf16 %v919_v30, %v917_v29  ;;  %v920_v36 = vmax.f32 %v701_v5, %v856_v31  ;;  %v707_v2 = vadd.f32 %v706_v33, %v417_v20  ;;  %v857_v51 = vmul.f32 0.2, %v705_v8  ;;  %v1598_v5 = vpop.permute.xlu0 %526  ;;  %v1603_v31 = vpop.permute.xlu1 %531 }
 0x1f7   :  { %v708_v58 = vpop.f32.mrf.mxu1  ;;  %v1783_v20 = vlaneseq  ;;  %1808 = vst [vmem:[#allocation15_spill] sm:$0xff] %v1598_v5  ;;  %1809 = vst [vmem:[#allocation16_spill] sm:$0xff] %v1603_v31 }
 0x1f8   :  { %1799 = vst [vmem:[#allocation6_spill] sm:$0xff] %v1564_v34  ;;  %v709_v63 = vadd.f32 %v708_v58, %v422_v21  ;;  %v1566_v37 = vpack.c.bf16 %v920_v36, %v918_v1  ;;  %v858_v52 = vmul.f32 0.2, %v707_v2  ;;  %v921_v39 = vmax.f32 %v705_v8, %v857_v51 }
 0x1f9   :  { %v710_v0 = vpop.f32.mrf.mxu1  ;;  %v1029_v23 = vshrl.u32 %v1783_v20, 7 }
 0x1fa   :  { %v859_v38 = vmul.f32 0.2, %v709_v63  ;;  %v711_v35 = vadd.f32 %v710_v0, %v422_v21  ;;  %v922_v42 = vmax.f32 %v707_v2, %v858_v52  ;;  %v1219_v21 = vmov 1966171168   ;;  %v1605_v33 = vpop.permute.xlu0 %516  ;;  %v1607_v2 = vpop.permute.xlu1 %521 }
 0x1fb   :  { %v1568_v49 = vpop.f32.mrf.mxu1  ;;  %v1026_v17 = vunpack.c.l.s4 %v1219_v21  ;;  %1810 = vst [vmem:[#allocation17_spill] sm:$0xff] %v1605_v33  ;;  %1811 = vst [vmem:[#allocation18_spill] sm:$0xff] %v1607_v2 }
 0x1fc   :  { %v923_v32 = vmax.f32 %v709_v63, %v859_v38  ;;  %v860_v40 = vmul.f32 0.2, %v711_v35 }
 0x1fd   :  { %v716_v41 = vpop.f32.mrf.mxu1  ;;  %v1027_v13 = vunpack.c.0.s8 %v1026_v17 }
 0x1fe   :  { %v1570_v43 = vpack.c.bf16 %v923_v32, %v921_v39  ;;  %v924_v44 = vmax.f32 %v711_v35, %v860_v40  ;;  %v1609_v51 = vpop.permute.xlu0 %506  ;;  %v1611_v52 = vpop.permute.xlu1 %511 }
 0x1ff   :  { %v718_v45 = vpop.f32.mrf.mxu1  ;;  %v1596_v10 = vsub.s32 %v1027_v13, %v1029_v23  ;;  %1812 = vst [vmem:[#allocation19_spill] sm:$0xff] %v1609_v51  ;;  %1813 = vst [vmem:[#allocation20_spill] sm:$0xff] %v1611_v52 }
 0x200   :  { %v1574_v47 = vpack.c.bf16 %v924_v44, %v922_v42  ;;  %v1625_v44 = vadd.f32 %v716_v41, %v1560_v14  ;;  %v1628_v21 = vadd.f32 %v718_v45, %v1562_v15 }
 0x201   :  { %v720_v48 = vpop.f32.mrf.mxu1  ;;  %1807 = vst [vmem:[#allocation14_spill] sm:$0xff] %v1596_v10  ;;  %v1038_v28 = vrot.slane %v1024_v25, %v1596_v10 }
 0x202   :  { %v1614_v38 = vadd.f32 %v720_v48, %v1562_v15  ;;  %v1616_v39 = vpop.permute.xlu0 %496  ;;  %v1642_v25 = vpop.permute.xlu1 %501 }
 0x203   :  { %v1576_v50 = vpop.f32.mrf.mxu1  ;;  %1073 = vmatprep.mubr.bf16.mxu0 %v1038_v28 }
 0x204   :  { %v1633_v23 = vmul.f32 0.2, %v1614_v38 }
 0x205   :  { %v726_v54 = vpop.f32.mrf.mxu1 }
 0x207   :  { %v728_v56 = vpop.f32.mrf.mxu1 }
 0x208   :  { %v1639_v13 = vadd.f32 %v728_v56, %v1558_v12 }
 0x209   :  { %v730_v57 = vpop.f32.mrf.mxu1 }
 0x20a   :  { %v1619_v32 = vadd.f32 %v730_v57, %v1558_v12  ;;  %v1636_v57 = vadd.f32 %v726_v54, %v1556_v11 }
 0x20b   :  { %v734_v22 = vpop.f32.mrf.mxu1 }
 0x20c   :  { %v1645_v15 = vmul.f32 0.2, %v1619_v32  ;;  %v1653_v54 = vadd.f32 %v734_v22, %v1552_v7 }
 0x20d   :  { %v736_v16 = vpop.f32.mrf.mxu1 }
 0x20e   :  { %v1622_v40 = vadd.f32 %v736_v16, %v1552_v7 }
 0x20f   :  { %v738_v9 = vpop.f32.mrf.mxu1 }
 0x210   :  { %v1656_v12 = vmul.f32 0.2, %v1622_v40 }
 0x211   :  { %v740_v27 = vpop.f32.mrf.mxu1 }
 0x212   :  { %v1648_v45 = vadd.f32 %v740_v27, %v1554_v19 }
 0x213   :  { %v1601_v29 = vpop.f32.mrf.mxu1 }
 0x215   :  { %v746_v30 = vpop.f32.mrf.mxu1 }
 0x216   :  { %v747_v7 = vadd.f32 %v746_v30, %v1548_v4 }
 0x217   :  { %v748_v8 = vpop.f32.mrf.mxu1 }
 0x218   :  { %v1670_v33 = vadd.f32 %v748_v8, %v1550_v6  ;;  %v874_v18 = vmul.f32 0.2, %v747_v7 }
 0x219   :  { %v750_v1 = vpop.f32.mrf.mxu1 }
 0x21a   :  { %v875_v59 = vmul.f32 0.2, %v1670_v33 }
 0x21b   :  { %v754_v36 = vpop.f32.mrf.mxu1 }
 0x21c   :  { %v755_v22 = vadd.f32 %v754_v36, %v1542_v61  ;;  %v745_v36 = vadd.f32 %v1601_v29, %v1548_v4 }
 0x21d   :  { %v756_v58 = vpop.f32.mrf.mxu1 }
 0x21e   :  { %v757_v28 = vadd.f32 %v756_v58, %v1542_v61  ;;  %v1662_v58 = vadd.f32 %v738_v9, %v1554_v19  ;;  %v492_v9 = vpop.permute.xlu1 %491  ;;  %v877_v26 = vmul.f32 0.2, %v755_v22  ;;  %v873_v29 = vmul.f32 0.2, %v745_v36 }
 0x21f   :  { %v758_v63 = vpop.f32.mrf.mxu1 }
 0x220   :  { %v759_v56 = vadd.f32 %v758_v63, %v1546_v3  ;;  %v871_v4 = vmul.f32 0.2, %v1662_v58 }
 0x221   :  { %v760_v0 = vpop.f32.mrf.mxu1 }
 0x222   :  { %v761_v17 = vadd.f32 %v760_v0, %v1546_v3  ;;  %v878_v3 = vmul.f32 0.2, %v757_v28 }
 0x223   :  { %v764_v35 = vpop.f32.mrf.mxu1 }
 0x224   :  { %v765_v16 = vadd.f32 %v764_v35, %v1540_v60  ;;  %v880_v20 = vmul.f32 0.2, %v761_v17 }
 0x225   :  { %v766_v42 = vpop.f32.mrf.mxu1 }
 0x226   :  { %v767_v48 = vadd.f32 %v766_v42, %v1540_v60  ;;  %v751_v60 = vadd.f32 %v750_v1, %v1550_v6  ;;  %v487_v42 = vpop.permute.xlu0 %486  ;;  %v1667_v1 = vmul.f32 0.2, %v1648_v45  ;;  %v944_v5 = vmax.f32 %v761_v17, %v880_v20 }
 0x227   :  { %v768_v41 = vpop.f32.mrf.mxu1 }
 0x228   :  { %v769_v0 = vadd.f32 %v768_v41, %v1544_v62  ;;  %v882_v24 = vmul.f32 0.2, %v767_v48  ;;  %v881_v41 = vmul.f32 0.2, %v765_v16  ;;  %v876_v2 = vmul.f32 0.2, %v751_v60 }
 0x229   :  { %v770_v35 = vpop.f32.mrf.mxu1 }
 0x22a   :  { %v883_v27 = vmul.f32 0.2, %v769_v0  ;;  %v771_v10 = vadd.f32 %v770_v35, %v1544_v62  ;;  %v879_v62 = vmul.f32 0.2, %v759_v56  ;;  %v946_v30 = vmax.f32 %v767_v48, %v882_v24 }
 0x22b   :  { %v774_v51 = vpop.f32.mrf.mxu1  ;;  %v945_v53 = vmax.f32 %v765_v16, %v881_v41  ;;  %v938_v16 = vmax.f32 %v747_v7, %v874_v18  ;;  %v937_v7 = vmax.f32 %v745_v36, %v873_v29  ;;  %v862_v36 = vmul.f32 0.2, %v1625_v44 }
 0x22c   :  { %v884_v63 = vmul.f32 0.2, %v771_v10  ;;  %v775_v52 = vadd.f32 %v774_v51, %v487_v42  ;;  %v947_v35 = vmax.f32 %v769_v0, %v883_v27  ;;  %v942_v51 = vmax.f32 %v757_v28, %v878_v3 }
 0x22d   :  { %v776_v19 = vpop.f32.mrf.mxu1  ;;  %v940_v0 = vmax.f32 %v751_v60, %v876_v2  ;;  %v943_v27 = vmax.f32 %v759_v56, %v879_v62  ;;  %v939_v60 = vmax.f32 %v1670_v33, %v875_v59  ;;  %v934_v59 = vmax.f32 %v1622_v40, %v1656_v12 }
 0x22e   :  { %v948_v31 = vmax.f32 %v771_v10, %v884_v63  ;;  %v777_v61 = vadd.f32 %v776_v19, %v487_v42  ;;  %v885_v46 = vmul.f32 0.2, %v775_v52  ;;  %v996_v34 = vpack.c.bf16 %v947_v35, %v945_v53 }
 0x22f   :  { %v778_v55 = vpop.f32.mrf.mxu1  ;;  %v995_v48 = vpack.c.bf16 %v944_v5, %v942_v51  ;;  %v941_v42 = vmax.f32 %v755_v22, %v877_v26  ;;  %v936_v53 = vmax.f32 %v1648_v45, %v1667_v1  ;;  %v993_v3 = vpack.c.bf16 %v940_v0, %v938_v16 }
 0x230   :  { %v779_v6 = vadd.f32 %v778_v55, %v492_v9  ;;  %v997_v8 = vpack.c.bf16 %v948_v31, %v946_v30  ;;  %v886_v24 = vmul.f32 0.2, %v777_v61  ;;  %v949_v55 = vmax.f32 %v775_v52, %v885_v46 }
 0x231   :  { %v780_v20 = vpop.f32.mrf.mxu1  ;;  %v994_v56 = vpack.c.bf16 %v943_v27, %v941_v42  ;;  %v725_v46 = vadd.f32 %v1576_v50, %v1556_v11  ;;  %v866_v26 = vmul.f32 0.2, %v1636_v57  ;;  %v869_v52 = vmul.f32 0.2, %v1653_v54 }
 0x232   :  { %v887_v10 = vmul.f32 0.2, %v779_v6  ;;  %v781_v17 = vadd.f32 %v780_v20, %v492_v9  ;;  %1041 = vmatprep.subr.bf16.mxu0 %v997_v8  ;;  %v950_v63 = vmax.f32 %v777_v61, %v886_v24  ;;  %v932_v11 = vmax.f32 %v1619_v32, %v1645_v15 }
 0x233   :  { %v784_v28 = vpop.f32.mrf.mxu1  ;;  %1042 = vmatpush1.bf16.msra.mxu0 %v996_v34  ;;  %v935_v50 = vmax.f32 %v1662_v58, %v871_v4  ;;  %v992_v35 = vpack.c.bf16 %v939_v60, %v937_v7  ;;  %v991_v40 = vpack.c.bf16 %v936_v53, %v934_v59  ;;  %v715_v12 = vadd.f32 %v1568_v49, %v1560_v14  ;;  %v1815_v59 = vld [vmem:[#allocation10_spill] sm:$0xff] }
 0x234   :  { %v951_v31 = vmax.f32 %v779_v6, %v887_v10  ;;  %v888_v41 = vmul.f32 0.2, %v781_v17  ;;  %v785_v2 = vadd.f32 %v784_v28, %v1616_v39  ;;  %1043 = vmatprep.subr.bf16.mxu0 %v995_v48  ;;  %v865_v51 = vmul.f32 0.2, %v725_v46 }
 0x235   :  { %v786_v5 = vpop.f32.mrf.mxu1  ;;  %v933_v6 = vmax.f32 %v1653_v54, %v869_v52  ;;  %v930_v32 = vmax.f32 %v1636_v57, %v866_v26  ;;  %v928_v27 = vmax.f32 %v1614_v38, %v1633_v23  ;;  %v861_v57 = vmul.f32 0.2, %v715_v12 }
 0x236   :  { %v1680_v62 = vpack.c.bf16 %v951_v31, %v949_v55  ;;  %v952_v18 = vmax.f32 %v781_v17, %v888_v41  ;;  %v787_v34 = vadd.f32 %v786_v5, %v1616_v39  ;;  %v889_v33 = vmul.f32 0.2, %v785_v2 }
 0x237   :  { %v788_v45 = vpop.f32.mrf.mxu1  ;;  %1044 = vmatpush1.bf16.msra.mxu0 %v994_v56  ;;  %v867_v39 = vmul.f32 0.2, %v1639_v13  ;;  %v990_v49 = vpack.c.bf16 %v935_v50, %v933_v6  ;;  %v989_v17 = vpack.c.bf16 %v932_v11, %v930_v32  ;;  %v929_v48 = vmax.f32 %v725_v46, %v865_v51  ;;  %v1814_v56 = vld [vmem:[#allocation6_spill] sm:$0xff]  ;;  %v1817_v11 = vld [vmem:[#allocation9_spill] sm:$0xff] }
 0x238   :  { %v789_v22 = vadd.f32 %v788_v45, %v1642_v25  ;;  %1045 = vmatprep.subr.bf16.mxu0 %v993_v3  ;;  %v1690_v1 = vpack.c.bf16 %v952_v18, %v950_v63  ;;  %v890_v9 = vmul.f32 0.2, %v787_v34  ;;  %v953_v15 = vmax.f32 %v785_v2, %v889_v33 }
 0x239   :  { %v790_v19 = vpop.f32.mrf.mxu1  ;;  %v931_v14 = vmax.f32 %v1639_v13, %v867_v39  ;;  %v926_v29 = vmax.f32 %v1625_v44, %v862_v36  ;;  %v925_v28 = vmax.f32 %v715_v12, %v861_v57 }
 0x23a   :  { %v891_v30 = vmul.f32 0.2, %v789_v22  ;;  %v791_v61 = vadd.f32 %v790_v19, %v1642_v25  ;;  %v863_v25 = vmul.f32 0.2, %v1628_v21  ;;  %v954_v54 = vmax.f32 %v787_v34, %v890_v9  ;;  %v1819_v9 = vld [vmem:[#allocation13_spill] sm:$0xff] }
 0x23b   :  { %v1701_v8 = vpop.f32.mrf.mxu1  ;;  %1046 = vmatpush1.bf16.msra.mxu0 %v992_v35  ;;  %v988_v23 = vpack.c.bf16 %v931_v14, %v929_v48  ;;  %v987_v42 = vpack.c.bf16 %v928_v27, %v926_v29  ;;  %v1818_v35 = vld [vmem:[#allocation8_spill] sm:$0xff] }
 0x23c   :  { %v955_v58 = vmax.f32 %v789_v22, %v891_v30  ;;  %v892_v0 = vmul.f32 0.2, %v791_v61  ;;  %1047 = vmatprep.subr.bf16.mxu0 %v991_v40  ;;  %v927_v38 = vmax.f32 %v1628_v21, %v863_v25  ;;  %v1821_v14 = vld [vmem:[#allocation16_spill] sm:$0xff] }
 0x23d   :  { %v1708_v20 = vpop.f32.mrf.mxu1 }
 0x23e   :  { %v1710_v24 = vpack.c.bf16 %v955_v58, %v953_v15  ;;  %v956_v10 = vmax.f32 %v791_v61, %v892_v0  ;;  %v986_v31 = vpack.c.bf16 %v927_v38, %v925_v28  ;;  %v1820_v58 = vld [vmem:[#allocation11_spill] sm:$0xff] }
 0x23f   :  { %v1712_v4 = vpop.f32.mrf.mxu1  ;;  %1048 = vmatpush1.bf16.msra.mxu0 %v990_v49 }
 0x240   :  { %1049 = vmatprep.subr.bf16.mxu0 %v989_v17  ;;  %v1715_v16 = vpack.c.bf16 %v956_v10, %v954_v54 }
 0x241   :  { %v1718_v13 = vpop.f32.mrf.mxu1 }
 0x243   :  { %v1720_v55 = vpop.f32.mrf.mxu1  ;;  %1050 = vmatpush1.bf16.msra.mxu0 %v988_v23 }
 0x244   :  { %1051 = vmatprep.subr.bf16.mxu0 %v987_v42 }
 0x245   :  { %v1722_v41 = vpop.f32.mrf.mxu1 }
 0x247   :  { %v1724_v2 = vpop.f32.mrf.mxu1  ;;  %1052 = vmatpush1.bf16.msra.mxu0 %v986_v31  ;;  %v1822_v31 = vld [vmem:[#allocation15_spill] sm:$0xff] }
 0x248   :  { %1053 = vmatprep.subr.bf16.mxu0 %v1574_v47 }
 0x249   :  { %v810_v44 = vpop.f32.mrf.mxu1 }
 0x24b   :  { %v814_v53 = vpop.f32.mrf.mxu1  ;;  %1054 = vmatpush1.bf16.msra.mxu0 %v1570_v43  ;;  %v1816_v43 = vld [vmem:[#allocation7_spill] sm:$0xff] }
 0x24c   :  { %1055 = vmatprep.subr.bf16.mxu0 %v1566_v37 }
 0x24d   :  { %v816_v21 = vpop.f32.mrf.mxu1 }
 0x24f   :  { %v818_v60 = vpop.f32.mrf.mxu1  ;;  %1056 = vmatpush1.bf16.msra.mxu0 %v1814_v56  ;;  %v817_v56 = vadd.f32 %v816_v21, %v1822_v31  ;;  %v1824_v21 = vld [vmem:[#allocation17_spill] sm:$0xff] }
 0x251   :  { %v820_v5 = vpop.f32.mrf.mxu1 }
 0x252   :  { %v821_v49 = vadd.f32 %v820_v5, %v1821_v14 }
 0x253   :  { %v824_v3 = vpop.f32.mrf.mxu1 }
 0x254   :  { %v825_v23 = vadd.f32 %v824_v3, %v1820_v58  ;;  %v815_v3 = vadd.f32 %v814_v53, %v1822_v31 }
 0x255   :  { %v826_v63 = vpop.f32.mrf.mxu1 }
 0x256   :  { %v827_v0 = vadd.f32 %v826_v63, %v1820_v58 }
 0x257   :  { %v828_v18 = vpop.f32.mrf.mxu1 }
 0x258   :  { %v829_v54 = vadd.f32 %v828_v18, %v1819_v9 }
 0x259   :  { %v830_v34 = vpop.f32.mrf.mxu1 }
 0x25a   :  { %v831_v30 = vadd.f32 %v830_v34, %v1819_v9  ;;  %v906_v34 = vmul.f32 0.2, %v827_v0  ;;  %v907_v5 = vmul.f32 0.2, %v829_v54 }
 0x25b   :  { %v834_v46 = vpop.f32.mrf.mxu1 }
 0x25c   :  { %v835_v32 = vadd.f32 %v834_v46, %v1817_v11  ;;  %v908_v57 = vmul.f32 0.2, %v831_v30 }
 0x25d   :  { %v836_v26 = vpop.f32.mrf.mxu1 }
 0x25e   :  { %v837_v50 = vadd.f32 %v836_v26, %v1817_v11  ;;  %v909_v42 = vmul.f32 0.2, %v835_v32  ;;  %v819_v26 = vadd.f32 %v818_v60, %v1821_v14  ;;  %v970_v11 = vmax.f32 %v827_v0, %v906_v34  ;;  %v1827_v34 = vld [vmem:[#allocation14_spill] sm:$0xff] }
 0x25f   :  { %v838_v52 = vpop.f32.mrf.mxu1 }
 0x260   :  { %v839_v61 = vadd.f32 %v838_v52, %v1815_v59  ;;  %v910_v25 = vmul.f32 0.2, %v837_v50 }
 0x261   :  { %v840_v7 = vpop.f32.mrf.mxu1 }
 0x262   :  { %v841_v33 = vadd.f32 %v840_v7, %v1815_v59  ;;  %v911_v10 = vmul.f32 0.2, %v839_v61  ;;  %v974_v63 = vmax.f32 %v837_v50, %v910_v25  ;;  %v1823_v7 = vld [vmem:[#allocation18_spill] sm:$0xff]  ;;  %v972_v59 = vmax.f32 %v831_v30, %v908_v57 }
 0x263   :  { %v844_v47 = vpop.f32.mrf.mxu1  ;;  %v809_v60 = vadd.f32 %v1724_v2, %v1823_v7  ;;  %v903_v50 = vmul.f32 0.2, %v819_v26 }
 0x264   :  { %v845_v37 = vadd.f32 %v844_v47, %v1816_v43  ;;  %v912_v12 = vmul.f32 0.2, %v841_v33  ;;  %v975_v52 = vmax.f32 %v839_v61, %v911_v10  ;;  %v811_v47 = vadd.f32 %v810_v44, %v1823_v7 }
 0x265   :  { %v846_v45 = vpop.f32.mrf.mxu1  ;;  %v971_v44 = vmax.f32 %v829_v54, %v907_v5  ;;  %v1009_v61 = vpack.c.bf16 %v972_v59, %v970_v11  ;;  %v1829_v11 = vlaneseq }
 0x266   :  { %v847_v22 = vadd.f32 %v846_v45, %v1816_v43  ;;  %v913_v15 = vmul.f32 0.2, %v845_v37  ;;  %v976_v48 = vmax.f32 %v841_v33, %v912_v12  ;;  %v904_v45 = vmul.f32 0.2, %v821_v49 }
 0x267   :  { %v848_v39 = vpop.f32.mrf.mxu1  ;;  %v905_v43 = vmul.f32 0.2, %v825_v23  ;;  %v900_v30 = vmul.f32 0.2, %v811_v47  ;;  %v901_v12 = vmul.f32 0.2, %v815_v3 }
 0x268   :  { %v849_v19 = vadd.f32 %v848_v39, %v1818_v35  ;;  %v914_v36 = vmul.f32 0.2, %v847_v22  ;;  %v977_v28 = vmax.f32 %v845_v37, %v913_v15  ;;  %v1011_v33 = vpack.c.bf16 %v976_v48, %v974_v63  ;;  %v1828_v63 = vld [vmem:[#allocation12_spill] sm:$0xff] }
 0x269   :  { %v850_v40 = vpop.f32.mrf.mxu1  ;;  %v807_v37 = vadd.f32 %v1722_v41, %v1824_v21  ;;  %v902_v39 = vmul.f32 0.2, %v817_v56  ;;  %v968_v53 = vmax.f32 %v821_v49, %v904_v45  ;;  %v969_v41 = vmax.f32 %v825_v23, %v905_v43 }
 0x26a   :  { %v915_v51 = vmul.f32 0.2, %v849_v19  ;;  %v851_v6 = vadd.f32 %v850_v40, %v1818_v35  ;;  %v978_v29 = vmax.f32 %v847_v22, %v914_v36  ;;  %v973_v22 = vmax.f32 %v835_v32, %v909_v42  ;;  %v1826_v36 = vld [vmem:[#allocation19_spill] sm:$0xff] }
 0x26b   :  { %v805_v40 = vadd.f32 %v1720_v55, %v1824_v21  ;;  %v966_v2 = vmax.f32 %v817_v56, %v902_v39  ;;  %v899_v15 = vmul.f32 0.2, %v809_v60  ;;  %v1008_v58 = vpack.c.bf16 %v971_v44, %v969_v41 }
 0x26c   :  { %v916_v27 = vmul.f32 0.2, %v851_v6  ;;  %v979_v17 = vmax.f32 %v849_v19, %v915_v51  ;;  %v1010_v35 = vpack.c.bf16 %v975_v52, %v973_v22  ;;  %v1825_v19 = vld [vmem:[#allocation20_spill] sm:$0xff]  ;;  %v797_v51 = vadd.f32 %v1708_v20, %v1826_v36 }
 0x26d   :  { %v801_v9 = vadd.f32 %v1718_v13, %v1825_v19  ;;  %v799_v32 = vadd.f32 %v1712_v4, %v1825_v19  ;;  %v967_v13 = vmax.f32 %v819_v26, %v903_v50  ;;  %v964_v25 = vmax.f32 %v811_v47, %v900_v30 }
 0x26e   :  { %v980_v38 = vmax.f32 %v851_v6, %v916_v27  ;;  %v1012_v18 = vpack.c.bf16 %v979_v17, %v977_v28  ;;  %v898_v6 = vmul.f32 0.2, %v807_v37  ;;  %v1007_v27 = vpack.c.bf16 %v968_v53, %v966_v2 }
 0x26f   :  { %v896_v0 = vmul.f32 0.2, %v801_v9  ;;  %v795_v55 = vadd.f32 %v1701_v8, %v1826_v36  ;;  %v897_v14 = vmul.f32 0.2, %v805_v40  ;;  %v965_v49 = vmax.f32 %v815_v3, %v901_v12 }
 0x270   :  { %v1013_v46 = vpack.c.bf16 %v980_v38, %v978_v29  ;;  %v894_v54 = vmul.f32 0.2, %v797_v51  ;;  %v962_v20 = vmax.f32 %v807_v37, %v898_v6  ;;  %v895_v10 = vmul.f32 0.2, %v799_v32 }
 0x271   :  { %v963_v17 = vmax.f32 %v809_v60, %v899_v15  ;;  %v1006_v57 = vpack.c.bf16 %v967_v13, %v965_v49  ;;  %v960_v48 = vmax.f32 %v801_v9, %v896_v0  ;;  %v893_v29 = vmul.f32 0.2, %v795_v55 }
 0x272   :  { %1057 = vmatprep.subr.bf16.mxu0 %v1013_v46  ;;  %v1005_v4 = vpack.c.bf16 %v964_v25, %v962_v20  ;;  %v961_v38 = vmax.f32 %v805_v40, %v897_v14  ;;  %v958_v23 = vmax.f32 %v797_v51, %v894_v54  ;;  %v959_v42 = vmax.f32 %v799_v32, %v895_v10 }
 0x273   :  { %1058 = vmatpush2.bf16.msra.mxu0 %v1012_v18  ;;  %v957_v8 = vmax.f32 %v795_v55, %v893_v29  ;;  %v1031_v46 = vrot.slane %v1828_v63, %v1827_v34  ;;  %v1015_v26 = vstv %s1781_s5  ;;  %s1220_s5 = smov [#allocation3]   ;;  %vm1112_vm2 = vcmp.lt.s32.totalorder %v1829_v11, 256 }
 0x274   :  { %1059 = vmatprep.subr.bf16.mxu0 %v1011_v33  ;;  %v1004_v28 = vpack.c.bf16 %v963_v17, %v961_v38  ;;  %v1003_v31 = vpack.c.bf16 %v960_v48, %v958_v23  ;;  %s1121_s23 = sshll.u32 %s1220_s5, 4  ;;  %s1122_s23 = int_to_ptr.vmem [resolvable:$true] %s1121_s23 }
 0x275   :  { %v1002_v56 = vpack.c.bf16 %v959_v42, %v957_v8  ;;  %s1195_s24 = scalar_lea.vmem %s1122_s23, 32  ;;  %p1200_p1 = scmp.lt.s32.totalorder %s1122_s23, %s1122_s23 }
 0x276   :  { %p1196_p0 = scmp.ne.s32.totalorder %s1122_s23, %s1195_s24  ;;  %p1201_p2 = scmp.lt.s32.totalorder %s1195_s24, %s1195_s24 }
 0x277   :  { %1060 = vmatpush2.bf16.msra.mxu0 %v1010_v35 }
 0x278   :  { %1061 = vmatprep.subr.bf16.mxu0 %v1009_v61  ;;  %p1202_p3 = por %p1201_p2, %p1200_p1 }
 0x27a   :  { %p1203_p4 = pnand %p1202_p3, %p1196_p0 }
 0x27b   :  { %1062 = vmatpush2.bf16.msra.mxu0 %v1008_v58 }
 0x27c   :  { %1063 = vmatprep.subr.bf16.mxu0 %v1007_v27 }
 0x27f   :  { %1064 = vmatpush2.bf16.msra.mxu0 %v1006_v57 }
 0x280   :  { %1065 = vmatprep.subr.bf16.mxu0 %v1005_v4 }
 0x283   :  { %1066 = vmatpush2.bf16.msra.mxu0 %v1004_v28 }
 0x284   :  { %1067 = vmatprep.subr.bf16.mxu0 %v1003_v31 }
 0x287   :  { %1068 = vmatpush2.bf16.msra.mxu0 %v1002_v56 }
 0x288   :  { %1069 = vmatprep.subr.bf16.mxu0 %v1715_v16 }
 0x28b   :  { %1070 = vmatpush2.bf16.msra.mxu0 %v1710_v24 }
 0x28c   :  { %1071 = vmatprep.subr.bf16.mxu0 %v1690_v1 }
 0x28f   :  { %1072 = vmatpush2.bf16.msra.mxu0 %v1680_v62 }
 0x292   :  { %1074 = vmatmul.mubr.bf16.vlgmr.msra.gmra.mxu0 %v1031_v46 }
 0x352   :  { %v1075_v5 = vpop.f32.mrf.mxu0 }
 0x353   :  { %v1076_v52 = vadd.f32 %v1075_v5, %v1015_v26 }
 0x354   :  { %v1077_v18 = vpop.f32.mrf.mxu0 }
 0x355   :  { %v1082_v7 = vsub.f32 0.0, %v1076_v52  ;;  %v1078_v47 = vadd.f32 %v1077_v18, %v1015_v26 }
 0x356   :  { %v1079_v16 = vpop.f32.mrf.mxu0 }
 0x357   :  { %v1084_v45 = vmul.f32 1.442695, %v1082_v7  ;;  %v1083_v24 = vsub.f32 0.0, %v1078_v47 }
 0x358   :  { %v1080_v59 = vpop.f32.mrf.mxu0 }
 0x359   :  { %1187 = vpow2.f32 %v1084_v45  ;;  %v1086_v1 = vmul.f32 1.442695, %v1083_v24 }
 0x35b   :  { %1189 = vpow2.f32 %v1086_v1 }
 0x366   :  { %v1188_v33 = vpop.eup %1187 }
 0x367   :  { %v1088_v3 = vadd.f32 1.0, %v1188_v33 }
 0x368   :  { %v1190_v62 = vpop.eup %1189 }
 0x369   :  { %v1089_v43 = vadd.f32 1.0, %v1190_v62  ;;  %1191 = vrcp.f32 %v1088_v3 }
 0x36b   :  { %1193 = vrcp.f32 %v1089_v43 }
 0x376   :  { %v1192_v22 = vpop.eup %1191 }
 0x378   :  { %v1194_v21 = vpop.eup %1193 }
 0x379   :  { %v1094_v37 = vcombine.low %v1192_v22, %v1194_v21 }
 0x37b   :  { %v1101_v39 = vrot.slane %v1094_v37, %v1827_v34 }
 0x37d   :  { %v1108_v60 = vrot.slane %v1101_v39, %v1827_v34 }
 0x37f   :  { %1114 = vst.msk [vmem:[#allocation3] sm:$0x3] %vm1112_vm2, %v1108_v60 }
 0x380   :  { %1206 = shalt.err (!%p1203_p4)
}
 0x381   :  { %1124 = dma.vmem_to_hbm [thread:$0]  %s1122_s23, 32, %s1782_s6, [#allocation4]  }
 0x382   :  { %1215 = dma.done.wait [#allocation4], 32  }
 0x383   :  { %1216 = vsyncadd [#allocation4], 4294967264 }
 0x384   :  { %1128 = vsyncpa [#allocation4], 1 }

</bundles_post_ra>
